<compile_context>
chip_gen: v7x
topology: tpu7x:2x2x1
jax: 0.10.0
libtpu: 0.0.40
codegen_flags: <defaults>
</compile_context>

<pallas_src>
import math
from functools import partial

import jax
import jax.numpy as jnp
from jax import lax
from jax.experimental import pallas as pl
from jax.experimental.pallas import tpu as pltpu

NEG_MASK = -100000000.0              # value used by torch masked_fill_ in the spec
_VMEM_LIMIT = 48 * 1024 * 1024       # scoped VMEM cap; leaves headroom on v7x (64 MiB)


def _pick_tile(dim, target, mult):
    """Largest tile <= target that divides `dim` and is a multiple of `mult`.
    A full-extent block (== dim) is always legal, so fall back to it."""
    if dim <= target:
        return dim
    start = (target // mult) * mult
    for cand in range(start, 0, -mult):
        if dim % cand == 0:
            return cand
    return dim


# -----------------------------------------------------------------------------
# Kernel 1: tiled linear projection   y = x @ W + b
# -----------------------------------------------------------------------------
def _linear_kernel(x_ref, w_ref, b_ref, o_ref, *, compute_dtype):
    x = x_ref[...].astype(compute_dtype)          # (tm, E_in)
    w = w_ref[...].astype(compute_dtype)          # (E_in, tn)  (pre-cast in bf16 mode)
    y = jnp.dot(x, w, preferred_element_type=jnp.float32)
    o_ref[...] = (y + b_ref[...].astype(jnp.float32)).astype(o_ref.dtype)


def linear(x, w, b, *, compute_dtype=jnp.float32, out_dtype=None,
           block_rows=256, block_cols=512):
    """x: (bs, S, E_in), w: (E_in, E_out), b: (E_out,) -> (bs, S, E_out)."""
    bs, s, e_in = x.shape
    e_out = w.shape[1]
    out_dtype = x.dtype if out_dtype is None else out_dtype
    rows = bs * s
    x2 = x.reshape(rows, e_in)                    # fold batch into rows (free)
    b2 = b.reshape(1, e_out)
    tm = _pick_tile(rows, block_rows, 8)
    tn = _pick_tile(e_out, block_cols, 128)
    y = pl.pallas_call(
        partial(_linear_kernel, compute_dtype=compute_dtype),
        out_shape=jax.ShapeDtypeStruct((rows, e_out), out_dtype),
        grid=(rows // tm, e_out // tn),
        in_specs=[
            pl.BlockSpec((tm, e_in), lambda i, j: (i, 0)),
            pl.BlockSpec((e_in, tn), lambda i, j: (0, j)),
            pl.BlockSpec((1, tn), lambda i, j: (0, j)),
        ],
        out_specs=pl.BlockSpec((tm, tn), lambda i, j: (i, j)),
        compiler_params=pltpu.CompilerParams(
            dimension_semantics=("parallel", "parallel"),
            vmem_limit_bytes=_VMEM_LIMIT),
    )(x2, w, b2)
    return y.reshape(bs, s, e_out)


# -----------------------------------------------------------------------------
# Kernel 2: q-tiled attention that also returns the attention matrix
#   grid = (batch, q_tiles); all heads processed per step (lane-dense output).
# -----------------------------------------------------------------------------
def _attn_probs_kernel(*refs, nh, hd, mask_mode, mask_heads, compute_dtype,
                       approx_recip):
    if mask_mode == "none":
        q_ref, k_ref, v_ref, o_ref, a_ref = refs
        mask_ref = None
    else:
        q_ref, k_ref, v_ref, mask_ref, o_ref, a_ref = refs

    # Tile-wide casts hoisted out of the per-head loop (no-ops when the
    # activations already arrive in compute_dtype).  Q is pre-scaled.
    q_all = q_ref[0].astype(compute_dtype)         # (tq, E)
    k_all = k_ref[0].astype(compute_dtype)         # (sk, E)
    v_all = v_ref[0].astype(compute_dtype)         # (sk, E)
    if mask_mode == "kv":
        bias_kv = mask_ref[0, 0]                   # (1, sk) additive bias

    outs = []
    for h in range(nh):                            # static per-head loop
        sl = slice(h * hd, (h + 1) * hd)
        # (tq, sk) = qh @ kh^T without materializing the transpose
        s = lax.dot_general(q_all[:, sl], k_all[:, sl], (((1,), (1,)), ((), ())),
                            preferred_element_type=jnp.float32)
        if mask_mode == "kv":
            s = s + bias_kv
        elif mask_mode == "full":
            s = s + mask_ref[0, h if mask_heads > 1 else 0]   # (tq, sk)

        m = jnp.max(s, axis=-1, keepdims=True)
        p = jnp.exp(s - m)
        denom = jnp.sum(p, axis=-1, keepdims=True)
        if approx_recip:
            attn = p * pl.reciprocal(denom, approx=True)
        else:
            attn = p / denom
        a_ref[0, h] = attn.astype(a_ref.dtype)
        outs.append(jnp.dot(attn.astype(compute_dtype), v_all[:, sl],
                            preferred_element_type=jnp.float32))
    # one lane-dense (tq, E) store instead of nh partial stores
    o_ref[0] = jnp.concatenate(outs, axis=-1).astype(o_ref.dtype)


def attention_with_probs(q, k, v, mask, mask_mode, *, nh, hd,
                         compute_dtype, block_q=128, attn_dtype=jnp.float32):
    bs, sq, e = q.shape
    sk = k.shape[1]
    approx = jnp.dtype(compute_dtype) != jnp.dtype(jnp.float32)

    # cap tq so the resident (nh, tq, sk) attention block stays VMEM friendly
    cap = max(8, (8 * 1024 * 1024) // max(1, nh * sk * 4))
    tq = _pick_tile(sq, min(block_q, cap), 8)

    in_specs = [
        pl.BlockSpec((1, tq, e), lambda b, qi: (b, qi, 0)),
        pl.BlockSpec((1, sk, e), lambda b, qi: (b, 0, 0)),   # K resident per batch
        pl.BlockSpec((1, sk, e), lambda b, qi: (b, 0, 0)),   # V resident per batch
    ]
    args = [q, k, v]
    mask_heads = 1
    if mask_mode == "kv":
        in_specs.append(pl.BlockSpec((1, 1, 1, sk), lambda b, qi: (b, 0, 0, 0)))
        args.append(mask.reshape(bs, 1, 1, sk))
    elif mask_mode == "full":
        mask_heads = mask.shape[1]                  # 1 or nh (no nh-fold broadcast in HBM)
        in_specs.append(pl.BlockSpec((1, mask_heads, tq, sk),
                                     lambda b, qi: (b, 0, qi, 0)))
        args.append(mask)

    out_shapes = (jax.ShapeDtypeStruct((bs, sq, e), q.dtype),
                  jax.ShapeDtypeStruct((bs, nh, sq, sk), attn_dtype))
    out_specs = (pl.BlockSpec((1, tq, e), lambda b, qi: (b, qi, 0)),
                 pl.BlockSpec((1, nh, tq, sk), lambda b, qi: (b, 0, qi, 0)))

    kernel = partial(_attn_probs_kernel, nh=nh, hd=hd, mask_mode=mask_mode,
                     mask_heads=mask_heads, compute_dtype=compute_dtype,
                     approx_recip=approx)
    return pl.pallas_call(
        kernel,
        out_shape=out_shapes,
        grid=(bs, sq // tq),
        in_specs=in_specs,
        out_specs=out_specs,
        compiler_params=pltpu.CompilerParams(
            dimension_semantics=("parallel", "parallel"),
            vmem_limit_bytes=_VMEM_LIMIT),
    )(*args)


# -----------------------------------------------------------------------------
# Kernel 3: flash-style attention (no attention matrix materialized)
#   grid = (batch, q_tiles, kv_tiles); online softmax in VMEM scratch.
# -----------------------------------------------------------------------------
def _attn_flash_kernel(*refs, nh, hd, mask_mode, mask_heads, compute_dtype,
                       approx_recip):
    if mask_mode == "none":
        q_ref, k_ref, v_ref, o_ref, m_sc, l_sc, acc_sc = refs
        mask_ref = None
    else:
        q_ref, k_ref, v_ref, mask_ref, o_ref, m_sc, l_sc, acc_sc = refs

    ki = pl.program_id(2)

    @pl.when(ki == 0)
    def _init():
        m_sc[...] = jnp.full(m_sc.shape, -1e30, jnp.float32)
        l_sc[...] = jnp.zeros(l_sc.shape, jnp.float32)
        acc_sc[...] = jnp.zeros(acc_sc.shape, jnp.float32)

    q_all = q_ref[0].astype(compute_dtype)         # (tq, E)  (Q pre-scaled)
    k_all = k_ref[0].astype(compute_dtype)         # (tk, E)
    v_all = v_ref[0].astype(compute_dtype)         # (tk, E)
    if mask_mode == "kv":
        bias_kv = mask_ref[0, 0]                   # (1, tk) additive bias

    for h in range(nh):                            # static per-head loop
        sl = slice(h * hd, (h + 1) * hd)
        s = lax.dot_general(q_all[:, sl], k_all[:, sl], (((1,), (1,)), ((), ())),
                            preferred_element_type=jnp.float32)   # (tq, tk)
        if mask_mode == "kv":
            s = s + bias_kv
        elif mask_mode == "full":
            s = s + mask_ref[0, h if mask_heads > 1 else 0]       # (tq, tk)

        m_prev = m_sc[h]                                          # (tq, 1)
        m_new = jnp.maximum(m_prev, jnp.max(s, axis=-1, keepdims=True))
        alpha = jnp.exp(m_prev - m_new)
        p = jnp.exp(s - m_new)
        l_sc[h] = alpha * l_sc[h] + jnp.sum(p, axis=-1, keepdims=True)
        acc_sc[h] = alpha * acc_sc[h] + jnp.dot(
            p.astype(compute_dtype), v_all[:, sl],
            preferred_element_type=jnp.float32)
        m_sc[h] = m_new

    @pl.when(ki == pl.num_programs(2) - 1)
    def _finalize():
        outs = []
        for h in range(nh):
            if approx_recip:
                inv = pl.reciprocal(l_sc[h], approx=True)
            else:
                inv = 1.0 / l_sc[h]
            outs.append(acc_sc[h] * inv)
        o_ref[0] = jnp.concatenate(outs, axis=-1).astype(o_ref.dtype)


def attention_flash(q, k, v, mask, mask_mode, *, nh, hd,
                    compute_dtype, block_q=256, block_k=256):
    bs, sq, e = q.shape
    sk = k.shape[1]
    approx = jnp.dtype(compute_dtype) != jnp.dtype(jnp.float32)

    tq = _pick_tile(sq, block_q, 8)
    if mask_mode == "full":
        # mask block's last dim is tk (lane axis): must be a multiple of 128
        # or the full extent sk.
        tk = _pick_tile(sk, block_k, 128)
    else:
        tk = _pick_tile(sk, block_k, 8)

    in_specs = [
        pl.BlockSpec((1, tq, e), lambda b, qi, ki: (b, qi, 0)),
        pl.BlockSpec((1, tk, e), lambda b, qi, ki: (b, ki, 0)),
        pl.BlockSpec((1, tk, e), lambda b, qi, ki: (b, ki, 0)),
    ]
    args = [q, k, v]
    mask_heads = 1
    if mask_mode == "kv":
        # (bs, sk) -> (bs, sk//tk, 1, tk): lane-oriented per-kv-tile mask rows,
        # trailing block dims equal the full array dims (no transposes in-kernel).
        in_specs.append(pl.BlockSpec((1, 1, 1, tk), lambda b, qi, ki: (b, ki, 0, 0)))
        args.append(mask.reshape(bs, sk // tk, 1, tk))
    elif mask_mode == "full":
        mask_heads = mask.shape[1]                  # 1 or nh
        in_specs.append(pl.BlockSpec((1, mask_heads, tq, tk),
                                     lambda b, qi, ki: (b, 0, qi, ki)))
        args.append(mask)

    kernel = partial(_attn_flash_kernel, nh=nh, hd=hd, mask_mode=mask_mode,
                     mask_heads=mask_heads, compute_dtype=compute_dtype,
                     approx_recip=approx)
    return pl.pallas_call(
        kernel,
        out_shape=jax.ShapeDtypeStruct((bs, sq, e), q.dtype),
        grid=(bs, sq // tq, sk // tk),
        in_specs=in_specs,
        out_specs=pl.BlockSpec((1, tq, e), lambda b, qi, ki: (b, qi, 0)),
        scratch_shapes=[
            pltpu.VMEM((nh, tq, 1), jnp.float32),   # running max
            pltpu.VMEM((nh, tq, 1), jnp.float32),   # running sum
            pltpu.VMEM((nh, tq, hd), jnp.float32),  # output accumulator
        ],
        compiler_params=pltpu.CompilerParams(
            dimension_semantics=("parallel", "parallel", "arbitrary"),
            vmem_limit_bytes=_VMEM_LIMIT),
    )(*args)


# -----------------------------------------------------------------------------
# merge_mask glue (mirrors the torch semantics) -> (mask, mode)
#   mode "none" : no mask
#   mode "kv"   : compact (bs, sk) float additive key-padding mask
#   mode "full" : (bs, mh, sq, sk) float additive mask, mh in {1, nh}
# -----------------------------------------------------------------------------
def _prepare_mask(attention_mask, key_padding_mask, bs, nh, sq, sk):
    if attention_mask is None and key_padding_mask is None:
        return None, "none"
    if attention_mask is None:
        kpm = key_padding_mask
        if kpm.dtype == jnp.bool_:
            kpm = jnp.where(kpm, NEG_MASK, 0.0)
        kpm = kpm.astype(jnp.float32).reshape(bs, sk)
        return kpm, "kv"
    am = attention_mask
    if am.dtype == jnp.bool_:
        am = jnp.where(am, NEG_MASK, 0.0)
    am = am.astype(jnp.float32)
    if key_padding_mask is not None:
        kpm = key_padding_mask
        if kpm.dtype == jnp.bool_:
            kpm = jnp.where(kpm, NEG_MASK, 0.0)
        kpm = kpm.astype(jnp.float32).reshape(bs, 1, 1, sk)
        am = am + kpm
    mh = am.shape[1]                # keep head dim compact (1 or nh): no HBM blowup
    return jnp.broadcast_to(am, (bs, mh, sq, sk)), "full"


# -----------------------------------------------------------------------------
# Module wrapper
# -----------------------------------------------------------------------------
class MultiHeadAttentionPallas:
    def __init__(self, embed_dim, nhead, dropout_p=0.0,
                 compute_dtype=jnp.float32, attn_dtype=jnp.float32,
                 block_q=256, block_k=256, key=None):
        assert embed_dim % nhead == 0
        # TODO(synk): stochastic F.dropout on the attention matrix not implemented.
        assert dropout_p == 0.0, "stochastic dropout not implemented in kernel"
        self.embed_dim = embed_dim
        self.nhead = nhead
        self.head_dim = embed_dim // nhead
        self.dropout_p = dropout_p
        self.compute_dtype = compute_dtype
        self.attn_dtype = attn_dtype
        self.block_q = block_q
        self.block_k = block_k

        key = jax.random.PRNGKey(1234) if key is None else key
        bound = 1.0 / math.sqrt(embed_dim)
        ks = jax.random.split(key, 8)

        def init_w(k):   # (in, out) layout
            return jax.random.uniform(k, (embed_dim, embed_dim), jnp.float32, -bound, bound)

        def init_b(k):
            return jax.random.uniform(k, (embed_dim,), jnp.float32, -bound, bound)

        # reference parameters (f32, unscaled) — used by reference_forward
        self.params = {
            "w_q": (init_w(ks[0]), init_b(ks[1])),
            "w_k": (init_w(ks[2]), init_b(ks[3])),
            "w_v": (init_w(ks[4]), init_b(ks[5])),
            "w_o": (init_w(ks[6]), init_b(ks[7])),
        }

        # kernel-ready weights:
        #  * 1/sqrt(head_dim) folded into the Q projection (zero in-kernel scaling)
        #  * weights pre-cast to bf16 in bf16 mode (halves weight DMA traffic);
        #    biases stay f32 (added after the f32 accumulation).
        use_bf16 = jnp.dtype(compute_dtype) == jnp.dtype(jnp.bfloat16)
        w_store = jnp.bfloat16 if use_bf16 else jnp.float32
        scale = 1.0 / math.sqrt(self.head_dim)

        wq, bq = self.params["w_q"]
        wk, bk = self.params["w_k"]
        wv, bv = self.params["w_v"]
        wo, bo = self.params["w_o"]
        wq_s, bq_s = wq * scale, bq * scale

        self._w_q = (wq_s.astype(w_store), bq_s)
        self._w_k = (wk.astype(w_store), bk)
        self._w_v = (wv.astype(w_store), bv)
        self._w_o = (wo.astype(w_store), bo)
        # fused projection weights (one activation pass instead of three/two)
        self._w_qkv = (jnp.concatenate([wq_s, wk, wv], axis=1).astype(w_store),
                       jnp.concatenate([bq_s, bk, bv], axis=0))
        self._w_kv = (jnp.concatenate([wk, wv], axis=1).astype(w_store),
                      jnp.concatenate([bk, bv], axis=0))

    def __call__(self, query, key, value, attention_mask=None,
                 key_padding_mask=None, return_attention=True):
        bs, sq, E = query.shape
        sk = key.shape[1]
        nh, hd = self.nhead, self.head_dim
        cdt = self.compute_dtype
        use_bf16 = jnp.dtype(cdt) == jnp.dtype(jnp.bfloat16)
        act_dtype = jnp.bfloat16 if use_bf16 else query.dtype

        # ----- projections (fused where the inputs allow it) -----
        if (query is key) and (key is value):            # self-attention: fused QKV
            qkv = linear(query, *self._w_qkv, compute_dtype=cdt, out_dtype=act_dtype)
            Q, K, V = qkv[..., :E], qkv[..., E:2 * E], qkv[..., 2 * E:]
        elif key is value:                               # cross-attention: fused KV
            Q = linear(query, *self._w_q, compute_dtype=cdt, out_dtype=act_dtype)
            kv = linear(key, *self._w_kv, compute_dtype=cdt, out_dtype=act_dtype)
            K, V = kv[..., :E], kv[..., E:]
        else:
            Q = linear(query, *self._w_q, compute_dtype=cdt, out_dtype=act_dtype)
            K = linear(key, *self._w_k, compute_dtype=cdt, out_dtype=act_dtype)
            V = linear(value, *self._w_v, compute_dtype=cdt, out_dtype=act_dtype)

        mask, mode = _prepare_mask(attention_mask, key_padding_mask, bs, nh, sq, sk)

        # ----- attention -----
        if return_attention:
            x, attn = attention_with_probs(
                Q, K, V, mask, mode, nh=nh, hd=hd, compute_dtype=cdt,
                block_q=self.block_q, attn_dtype=self.attn_dtype)
        else:
            # flash path: no O(S^2) attention-matrix writeback for any mask mode
            x = attention_flash(
                Q, K, V, mask, mode, nh=nh, hd=hd, compute_dtype=cdt,
                block_q=self.block_q, block_k=self.block_k)
            attn = None

        # ----- output projection -----
        x = linear(x, *self._w_o, compute_dtype=cdt, out_dtype=query.dtype)
        return x, attn


# -----------------------------------------------------------------------------
# Pure-JAX reference for verification (faithful to the torch module)
# -----------------------------------------------------------------------------
def reference_forward(mha, query, key, value, attention_mask=None, key_padding_mask=None):
    bs, sq, E = query.shape
    sk = key.shape[1]
    nh, hd = mha.nhead, mha.head_dim
    wq, bq = mha.params["w_q"]
    wk, bk = mha.params["w_k"]
    wv, bv = mha.params["w_v"]
    wo, bo = mha.params["w_o"]

    Q = (query @ wq + bq).reshape(bs, sq, nh, hd).transpose(0, 2, 1, 3)
    K = (key @ wk + bk).reshape(bs, sk, nh, hd).transpose(0, 2, 1, 3)
    V = (value @ wv + bv).reshape(bs, sk, nh, hd).transpose(0, 2, 1, 3)

    score = jnp.einsum("bhqd,bhkd->bhqk", Q, K) / math.sqrt(hd)
    mask, mode = _prepare_mask(attention_mask, key_padding_mask, bs, nh, sq, sk)
    if mode == "kv":
        score = score + mask.reshape(bs, 1, 1, sk)
    elif mode == "full":
        score = score + mask
    attn = jax.nn.softmax(score, axis=-1)
    x = jnp.einsum("bhqk,bhkd->bhqd", attn, V)
    x = x.transpose(0, 2, 1, 3).reshape(bs, sq, E)
    x = x @ wo + bo
    return x, attn


if __name__ == "__main__":
    bs, seq, embed_dim, nhead = 2, 16, 32, 4

    root = jax.random.PRNGKey(0)
    k_q, k_k, k_v, k_params = jax.random.split(root, 4)
    query = jax.random.normal(k_q, (bs, seq, embed_dim), jnp.float32)
    key_t = jax.random.normal(k_k, (bs, seq, embed_dim), jnp.float32)
    value = jax.random.normal(k_v, (bs, seq, embed_dim), jnp.float32)

    # boolean key padding mask: pad last 3 positions of batch 1
    key_padding_mask = jnp.zeros((bs, seq), jnp.bool_).at[1, -3:].set(True)

    # small blocks to exercise the q/kv tiling and online-softmax accumulation
    mha = MultiHeadAttentionPallas(embed_dim, nhead, dropout_p=0.0,
                                   compute_dtype=jnp.float32, key=k_params,
                                   block_q=8, block_k=8)

    # 1) f32, separate Q/K/V projections, key-padding mask, attention returned.
    out1, attn1 = mha(query, key_t, value, key_padding_mask=key_padding_mask)
    out1 = jax.block_until_ready(out1)
    attn1 = jax.block_until_ready(attn1)
    ref_out1, ref_attn1 = reference_forward(mha, query, key_t, value,
                                            key_padding_mask=key_padding_mask)
    assert out1.shape == (bs, seq, embed_dim)
    assert attn1.shape == (bs, nhead, seq, seq)
    assert jnp.allclose(out1, ref_out1, atol=1e-4, rtol=1e-4)
    assert jnp.allclose(attn1, ref_attn1, atol=2e-5, rtol=1e-5)

    # 2) f32, flash path with key-padding mask (no attention matrix writeback).
    out2, attn2 = mha(query, key_t, value, key_padding_mask=key_padding_mask,
                      return_attention=False)
    out2 = jax.block_until_ready(out2)
    assert attn2 is None
    assert jnp.allclose(out2, ref_out1, atol=1e-4, rtol=1e-4)

    # 3) f32, fused K/V projection + full additive mask (bool causal + key padding).
    causal = jnp.triu(jnp.ones((seq, seq), jnp.bool_), k=1).reshape(1, 1, seq, seq)
    causal = jnp.broadcast_to(causal, (bs, 1, seq, seq))
    out3, attn3 = mha(query, key_t, key_t, attention_mask=causal,
                      key_padding_mask=key_padding_mask)
    out3 = jax.block_until_ready(out3)
    attn3 = jax.block_until_ready(attn3)
    ref_out3, ref_attn3 = reference_forward(mha, query, key_t, key_t,
                                            attention_mask=causal,
                                            key_padding_mask=key_padding_mask)
    assert jnp.allclose(out3, ref_out3, atol=1e-4, rtol=1e-4)
    assert jnp.allclose(attn3, ref_attn3, atol=2e-5, rtol=1e-5)

    # 4) f32, full additive mask on the flash path (no attention returned).
    out4, attn4 = mha(query, key_t, key_t, attention_mask=causal,
                      key_padding_mask=key_padding_mask, return_attention=False)
    out4 = jax.block_until_ready(out4)
    assert attn4 is None
    assert jnp.allclose(out4, ref_out3, atol=1e-4, rtol=1e-4)

    # 5) bf16 compute, self-attention (fused QKV projection), flash path.
    mha_bf16 = MultiHeadAttentionPallas(embed_dim, nhead, dropout_p=0.0,
                                        compute_dtype=jnp.bfloat16, key=k_params,
                                        block_q=8, block_k=8)
    out5, _ = mha_bf16(query, query, query, return_attention=False)
    out5 = jax.block_until_ready(out5)
    ref_out5, _ = reference_forward(mha_bf16, query, query, query)
    assert out5.dtype == query.dtype
    assert jnp.allclose(out5, ref_out5, atol=5e-2, rtol=5e-2)

    print("KERNEL_OK")
</pallas_src>

<mosaic_0001>
module attributes {stable_mosaic.version = 11 : i64} {
  func.func @_linear_kernel(%arg0: i32, %arg1: i32, %arg2: memref<32x32xf32, #tpu.memory_space<vmem>>, %arg3: memref<32x32xf32, #tpu.memory_space<vmem>>, %arg4: memref<1x32xf32, #tpu.memory_space<vmem>>, %arg5: memref<32x32xf32, #tpu.memory_space<vmem>>) attributes {dimension_semantics = [#tpu.dimension_semantics<parallel>, #tpu.dimension_semantics<parallel>], iteration_bounds = array<i64: 1, 1>, scalar_prefetch = 0 : i64, scratch_operands = 0 : i64, tpu.core_type = #tpu.core_type<tc>, window_params = [{transform_indices = @transform_0, window_bounds = array<i64: 32, 32>}, {transform_indices = @transform_1, window_bounds = array<i64: 32, 32>}, {transform_indices = @transform_2, window_bounds = array<i64: 1, 32>}, {transform_indices = @transform_3, window_bounds = array<i64: 32, 32>}]} {
    %c0 = arith.constant 0 : index
    %c0_0 = arith.constant 0 : index
    %0 = vector.load %arg2[%c0, %c0_0] : memref<32x32xf32, #tpu.memory_space<vmem>>, vector<32x32xf32>
    %c0_1 = arith.constant 0 : index
    %c0_2 = arith.constant 0 : index
    %1 = vector.load %arg3[%c0_1, %c0_2] : memref<32x32xf32, #tpu.memory_space<vmem>>, vector<32x32xf32>
    %cst = arith.constant dense<0.000000e+00> : vector<32x32xf32>
    %2 = tpu.matmul %0, %1, %cst {dimension_numbers = #tpu.dot_dimension_numbers<[1], [0], [0], [1], [0, 0, 1, 1], [], []>} : vector<32x32xf32>, vector<32x32xf32>, vector<32x32xf32> -> vector<32x32xf32>
    %c0_3 = arith.constant 0 : index
    %c0_4 = arith.constant 0 : index
    %3 = vector.load %arg4[%c0_3, %c0_4] : memref<1x32xf32, #tpu.memory_space<vmem>>, vector<1x32xf32>
    %4 = vector.broadcast %3 : vector<1x32xf32> to vector<32x32xf32>
    %5 = arith.addf %2, %4 : vector<32x32xf32>
    %c0_5 = arith.constant 0 : index
    %c0_6 = arith.constant 0 : index
    %6 = vector.load %arg5[%c0_5, %c0_6] : memref<32x32xf32, #tpu.memory_space<vmem>>, vector<32x32xf32>
    tpu.vector_store %arg5[%c0_5, %c0_6], %5 {strides = array<i32>} : memref<32x32xf32, #tpu.memory_space<vmem>>, vector<32x32xf32>,
    return
  }
  func.func @transform_0(%arg0: i32, %arg1: i32) -> (i32, i32) {
    %c0_i32 = arith.constant 0 : i32
    %c0_i32_0 = arith.constant 0 : i32
    return %arg0, %c0_i32 : i32, i32
  }
  func.func @transform_1(%arg0: i32, %arg1: i32) -> (i32, i32) {
    %c0_i32 = arith.constant 0 : i32
    %c0_i32_0 = arith.constant 0 : i32
    return %c0_i32, %arg1 : i32, i32
  }
  func.func @transform_2(%arg0: i32, %arg1: i32) -> (i32, i32) {
    %c0_i32 = arith.constant 0 : i32
    %c0_i32_0 = arith.constant 0 : i32
    return %c0_i32, %arg1 : i32, i32
  }
  func.func @transform_3(%arg0: i32, %arg1: i32) -> (i32, i32) {
    %c0_i32 = arith.constant 0 : i32
    return %arg0, %arg1 : i32, i32
  }
}

</mosaic_0001>

<bundles_post_ra>
// kernel: tpu_custom_call.1
= control target key start
LH: loop header
LB: loop body
LE: loop exit
PB: predicated region body
PF: predicated region fallthrough
CT: control target
= control target key end

     0   :  { %8 = vsyncpa [#allocation3], 0  ;;  %s375_s0 = inlined_call_operand.hbm [shape: f32[32,32], index: 0, kind: input, shape index: {}]   ;;  %s376_s1 = inlined_call_operand.hbm [shape: f32[32,32], index: 1, kind: input, shape index: {}]   ;;  %s377_s2 = inlined_call_operand.vmem [shape: f32[1,32], index: 2, kind: input, shape index: {}]   ;;  %s378_s3 = inlined_call_operand.hbm [shape: f32[32,32], index: 3, kind: output, shape index: {}]  }
   0x1   :  { %9 = vsyncpa [#allocation6], 0 }
   0x2   :  { %10 = vsyncpa [#allocation4], 0  ;;  %s294_s12 = smov [#allocation2]   ;;  %s222_s16 = scalar_lea.hbm %s375_s0, 512 }
   0x3   :  { %s16_s13 = sshll.u32 %s294_s12, 4  ;;  %p223_p0 = scmp.ne.s32.totalorder %s375_s0, %s222_s16  ;;  %s17_s13 = int_to_ptr.vmem [resolvable:$true] %s16_s13 }
   0x4   :  { %p226_p1 = scmp.lt.u32.totalorder %s222_s16, %s375_s0 }
   0x6   :  { %p228_p2 = pnand %p226_p1, %p223_p0 }
   0x8   :  { %231 = shalt.err (!%p228_p2)
}
   0x9   :  { %s232_s21 = scalar_lea.vmem %s17_s13, 512  ;;  %p237_p4 = scmp.lt.s32.totalorder %s17_s13, %s17_s13 }
   0xa   :  { %p233_p3 = scmp.ne.s32.totalorder %s17_s13, %s232_s21  ;;  %p238_p5 = scmp.lt.s32.totalorder %s232_s21, %s232_s21 }
   0xc   :  { %p239_p6 = por %p238_p5, %p237_p4 }
   0xe   :  { %p240_p7 = pnand %p239_p6, %p233_p3 }
  0x10   :  { %243 = shalt.err (!%p240_p7)
}
  0x11   :  { %s295_s22 = smov 128   ;;  %s296_s23 = smov 8  }
  0x12   :  { %22 = dma.hbm_to_vmem [thread:$0]  %s375_s0, 512, %s17_s13, [#allocation3], %s295_s22, %s295_s22, %s296_s23  }
  0x13   :  { %s297_s26 = smov [#allocation5]   ;;  %s244_s30 = scalar_lea.hbm %s376_s1, 512 }
  0x14   :  { %s28_s27 = sshll.u32 %s297_s26, 4  ;;  %p245_p8 = scmp.ne.s32.totalorder %s376_s1, %s244_s30  ;;  %s29_s27 = int_to_ptr.vmem [resolvable:$true] %s28_s27 }
  0x15   :  { %p248_p9 = scmp.lt.u32.totalorder %s244_s30, %s376_s1 }
  0x17   :  { %p250_p10 = pnand %p248_p9, %p245_p8 }
  0x19   :  { %253 = shalt.err (!%p250_p10)
}
  0x1a   :  { %s254_s8 = scalar_lea.vmem %s29_s27, 512  ;;  %p259_p12 = scmp.lt.s32.totalorder %s29_s27, %s29_s27 }
  0x1b   :  { %p255_p11 = scmp.ne.s32.totalorder %s29_s27, %s254_s8  ;;  %p260_p13 = scmp.lt.s32.totalorder %s254_s8, %s254_s8 }
  0x1d   :  { %p261_p0 = por %p260_p13, %p259_p12 }
  0x1f   :  { %p262_p1 = pnand %p261_p0, %p255_p11 }
  0x21   :  { %265 = shalt.err (!%p262_p1)
}
  0x22   :  { %34 = dma.hbm_to_vmem [thread:$0]  %s376_s1, 512, %s29_s27, [#allocation6], %s295_s22, %s295_s22, %s296_s23  }
  0x23   :  { %288 = dma.done.wait [#allocation3], 512  }
  0x24   :  { %289 = vsyncadd [#allocation3], 4294966784 }
  0x25   :  { %290 = dma.done.wait [#allocation6], 512  }
  0x26   :  { %291 = vsyncadd [#allocation6], 4294966784  ;;  %vm58_vm0 = vcmask 261120   ;;  %v47_v0 = vld [vmem:[#allocation5] sm:$0xff]  ;;  %v48_v1 = vld [vmem:[#allocation5 + $0x8] sm:$0xff]  ;;  %s298_s11 = smov [#allocation7]  }
  0x27   :  { %v49_v2 = vld [vmem:[#allocation5 + $0x10] sm:$0xff]  ;;  %v205_v3 = vpack.c.bf16 %v48_v1, %v47_v0  ;;  %v50_v4 = vld [vmem:[#allocation5 + $0x18] sm:$0xff]  ;;  %v43_v5 = vld [vmem:[#allocation2] sm:$0xff]  ;;  %s165_s12 = sshll.u32 %s298_s11, 4  ;;  %s166_s12 = int_to_ptr.vmem [resolvable:$true] %s165_s12 }
  0x28   :  { %v45_v6 = vld [vmem:[#allocation2 + $0x10] sm:$0xff]  ;;  %v209_v7 = vpack.c.bf16 %v50_v4, %v49_v2  ;;  %199 = vmatprep.mubr.msk.f32.mxu0 %vm58_vm0, %v43_v5  ;;  %v44_v8 = vld [vmem:[#allocation2 + $0x8] sm:$0xff]  ;;  %v46_v9 = vld [vmem:[#allocation2 + $0x18] sm:$0xff]  ;;  %p271_p3 = scmp.lt.s32.totalorder %s166_s12, %s166_s12 }
  0x29   :  { %202 = vmatprep.mubr.msk.f32.mxu1 %vm58_vm0, %v45_v6  ;;  %206 = vmatprep.subr.bf16.mxu0 %v205_v3  ;;  %v178_v10 = vld [vmem:[%s377_s2] ss:$0 sm:$0xff]  ;;  %s266_s2 = scalar_lea.vmem %s166_s12, 512 }
  0x2a   :  { %213 = vmatprep.subr.bf16.mxu1 %v205_v3  ;;  %208 = vmatpush3.bf16.msra.mxu0 %v205_v3  ;;  %p267_p2 = scmp.ne.s32.totalorder %s166_s12, %s266_s2  ;;  %p272_p4 = scmp.lt.s32.totalorder %s266_s2, %s266_s2 }
  0x2b   :  { %215 = vmatpush3.bf16.msra.mxu1 %v205_v3  ;;  %210 = vmatprep.subr.bf16.mxu0 %v209_v7 }
  0x2c   :  { %214 = vmatprep.subr.bf16.mxu1 %v209_v7  ;;  %p273_p5 = por %p272_p4, %p271_p3 }
  0x2e   :  { %212 = vmatpush3.bf16.msra.mxu0 %v209_v7  ;;  %p274_p6 = pnand %p273_p5, %p267_p2 }
  0x2f   :  { %216 = vmatpush3.bf16.msra.mxu1 %v209_v7 }
  0x31   :  { %200 = vmatmul.mubr.msk.f32.vlgmr.msra.gmra.mrb[0].mxu0 %vm58_vm0, %v44_v8 }
  0x32   :  { %203 = vmatmul.mubr.msk.f32.vlgmr.msra.gmra.mrb[0].mxu1 %vm58_vm0, %v46_v9 }
 0x104   :  { %v201_v11 = vpop.f32.mrb[0].mxu0 }
 0x105   :  { %v204_v12 = vpop.f32.mrb[0].mxu1  ;;  %v143_v13 = vadd.f32 %v201_v11, %v178_v10  ;;  %v137_v15 = vpop.f32.mrb[1].mxu0 }
 0x106   :  { %v153_v14 = vadd.f32 %v204_v12, %v178_v10  ;;  %v147_v16 = vpop.f32.mrb[1].mxu1  ;;  %v138_v17 = vadd.f32 %v178_v10, %v137_v15 }
 0x107   :  { %v148_v18 = vadd.f32 %v178_v10, %v147_v16  ;;  %157 = vst.msk [vmem:[#allocation7 + $0x8] sm:$0xff] %vm58_vm0, %v143_v13 }
 0x108   :  { %159 = vst.msk [vmem:[#allocation7 + $0x18] sm:$0xff] %vm58_vm0, %v153_v14  ;;  %156 = vst.msk [vmem:[#allocation7] sm:$0xff] %vm58_vm0, %v138_v17 }
 0x109   :  { %158 = vst.msk [vmem:[#allocation7 + $0x10] sm:$0xff] %vm58_vm0, %v148_v18 }
 0x10a   :  { %277 = shalt.err (!%p274_p6)
}
 0x10b   :  { %s278_s15 = scalar_lea.hbm %s378_s3, 512 }
 0x10c   :  { %p279_p7 = scmp.ne.s32.totalorder %s378_s3, %s278_s15  ;;  %p282_p8 = scmp.lt.u32.totalorder %s278_s15, %s378_s3 }
 0x10e   :  { %p284_p9 = pnand %p282_p8, %p279_p7 }
 0x110   :  { %287 = shalt.err (!%p284_p9)
}
 0x111   :  { %171 = dma.vmem_to_hbm [thread:$0]  %s166_s12, 512, %s378_s3, [#allocation4], %s295_s22, %s295_s22, %s296_s23  }
 0x112   :  { %292 = dma.done.wait [#allocation4], 512  }
 0x113   :  { %293 = vsyncadd [#allocation4], 4294966784 }
 0x114   :  { %175 = vsyncpa [#allocation3], 1 }
 0x115   :  { %176 = vsyncpa [#allocation6], 1 }
 0x116   :  { %177 = vsyncpa [#allocation4], 1 }

</bundles_post_ra>
